<compile_context>
chip_gen: v5e
topology: v5e:2x2
jax: 0.10.0
libtpu: 0.0.40
codegen_flags: <defaults>
</compile_context>

<pallas_src>
import math

import jax
import jax.numpy as jnp
from jax import lax
from jax.experimental import pallas as pl
from jax.experimental.pallas import tpu as pltpu

# ---- config (mirrors the BertConfig fields the module reads) ----
BATCH = 2
SEQ = 16
HIDDEN = 32
NUM_HEADS = 1                 # required for the distance matmul in the reference code
HEAD_SIZE = HIDDEN // NUM_HEADS
DISTANCE_TYPE = 8
LN_EPS = 1e-12


def _bert_attn_dist_kernel(hs_ref, mask_ref, relmask_ref, w_ref, b_ref, out_ref):
    f32 = jnp.float32
    nb, S, H = hs_ref.shape
    H4 = 4 * H

    b_all = b_ref[...]                                   # [4, 4H]

    # Fold batch rows together: one [nb*S, H] @ [H, 4H] MXU pass produces q|k|v|dist.
    x2 = hs_ref[...].reshape(nb * S, H)                  # leading-dim merge only -> layout-free
    proj = lax.dot_general(x2, w_ref[0], (((1,), (0,)), ((), ())),
                           preferred_element_type=f32) + b_all[0:1, :]   # [nb*S, 4H]

    proj3 = proj.reshape(nb, S, H4)                      # leading-dim split -> layout-free
    q3 = proj3[:, :, 0 * H:1 * H]                        # already scaled by 1/sqrt(head_size)
    k3 = proj3[:, :, 1 * H:2 * H]
    v3 = proj3[:, :, 2 * H:3 * H]
    wdd = proj3[:, :, 3 * H:3 * H + 1]                   # folded distance term q . dist_w[1]

    # attention scores: Q @ K^T (scale already folded into q), plus
    # torch.gather(q @ dist_w^T, index=rel) * (rel == 1) == (rel == 1) * (q . dist_w[1]),
    # plus the additive attention mask broadcast over query rows.
    scores = jnp.einsum('bqd,bkd->bqk', q3, k3, preferred_element_type=f32)   # [nb,S,S]
    scores = scores + relmask_ref[...].astype(f32) * wdd + mask_ref[...]

    # softmax along the key axis
    m = jnp.max(scores, axis=-1, keepdims=True)
    e = jnp.exp(scores - m)
    inv_l = pl.reciprocal(jnp.sum(e, axis=-1, keepdims=True), approx=True)
    probs = e * inv_l
    # TODO(synk): attention-probs dropout is identity in eval/inference mode (no RNG applied).

    ctx2 = jnp.einsum('bqk,bkd->bqd', probs, v3,
                      preferred_element_type=f32).reshape(nb * S, H)          # [nb*S, H]

    # BertSelfOutput: dense -> (dropout: identity) -> residual add -> LayerNorm
    # w_ref[1] is [wo | zeros] (extra MXU columns are free), bias row 1 is [bo | zeros].
    dense = (lax.dot_general(ctx2, w_ref[1], (((1,), (0,)), ((), ())),
                             preferred_element_type=f32) + b_all[1:2, :])[:, :H]
    y = dense + x2
    mu = jnp.mean(y, axis=-1, keepdims=True)
    var = jnp.maximum(jnp.mean(y * y, axis=-1, keepdims=True) - mu * mu, 0.0)  # one-pass stats
    gamma = b_all[2:3, :H]
    beta = b_all[3:4, :H]
    out = (y - mu) * lax.rsqrt(var + LN_EPS) * gamma + beta
    out_ref[...] = out.reshape(nb, S, H).astype(out_ref.dtype)


def _num_tensorcores():
    """Best-effort TensorCores-per-chip query (v7x=2, v5e/v6e=1)."""
    try:
        info = pltpu.get_tpu_info()
        for attr in ("num_cores", "num_tensorcores", "tensorcores_per_chip", "core_count"):
            v = getattr(info, attr, None)
            if isinstance(v, int) and v > 0:
                return v
    except Exception:
        pass
    try:
        kind = jax.devices()[0].device_kind.lower()
        if "v7" in kind or "7x" in kind:
            return 2
    except Exception:
        pass
    return 1


def _default_grid_steps(B):
    # Per-grid-step overhead (~0.35us / ~600cyc) dwarfs per-batch compute at these sizes:
    # collapse everything into one grid step.  Only when the batch is large enough AND the
    # chip has two TensorCores (v7x) split into two steps (nb = B//2 per step) so both TCs
    # get a big folded projection block each.
    if B < 8 or B % 2 != 0:
        return 1
    return 2 if _num_tensorcores() >= 2 else 1


def bert_attention_distance(hs, attn_mask_b1s, rel, params, grid_steps=None):
    B, S, H = hs.shape
    if grid_steps is None:
        grid_steps = _default_grid_steps(B)
    assert B % grid_steps == 0
    nb = B // grid_steps

    f32 = jnp.float32
    inv = 1.0 / math.sqrt(HEAD_SIZE)

    # ---- host-side folding (tiny one-off XLA ops) ----
    wq_s = params["wq"] * inv                       # fold 1/sqrt(d) into the query projection
    bq_s = params["bq"] * inv
    dw1 = params["dist_w"][1]                       # only row 1 of the distance table is live

    # Fold the distance dot into an extra projection column:
    #   (x @ wq_s + bq_s) . dw1 == x @ (wq_s @ dw1) + bq_s . dw1
    dcol = wq_s @ dw1                               # [H]
    dbias = jnp.dot(bq_s[0], dw1)                   # scalar

    dcol_pad = jnp.zeros((H, H), f32).at[:, 0].set(dcol)
    w_in = jnp.concatenate([wq_s, params["wk"], params["wv"], dcol_pad], axis=1)      # [H, 4H]
    w_out = jnp.concatenate([params["wo"], jnp.zeros((H, 3 * H), f32)], axis=1)       # [H, 4H]
    w_stack = jnp.stack([w_in, w_out], axis=0)                                        # [2, H, 4H]

    def pad4(v):                                    # [1, H] -> [1, 4H]
        return jnp.concatenate([v, jnp.zeros((1, 3 * H), f32)], axis=1)

    db_row = jnp.zeros((1, H), f32).at[0, 0].set(dbias)
    b_in = jnp.concatenate([bq_s, params["bk"], params["bv"], db_row], axis=1)        # [1, 4H]
    b_stack = jnp.concatenate(
        [b_in, pad4(params["bo"]), pad4(params["ln_g"]), pad4(params["ln_b"])], axis=0)  # [4, 4H]

    relmask = (rel == 1).astype(jnp.bfloat16)       # 0/1 exact in bf16, half the HBM traffic

    def batched(shape):
        return pl.BlockSpec(shape, lambda g: (g,) + (0,) * (len(shape) - 1))

    def full(shape):
        return pl.BlockSpec(shape, lambda g: (0,) * len(shape))

    in_specs = [
        batched((nb, S, H)),            # hidden_states
        batched((nb, 1, S)),            # additive attention mask [B,1,S]
        batched((nb, S, S)),            # (rel == 1) mask, bf16
        full((2, H, 4 * H)),            # stacked weights  [qkv+dist | output dense]
        full((4, 4 * H)),               # stacked vectors  [b_qkvd | bo | gamma | beta]
    ]

    return pl.pallas_call(
        _bert_attn_dist_kernel,
        out_shape=jax.ShapeDtypeStruct((B, S, H), jnp.float32),
        grid_spec=pltpu.PrefetchScalarGridSpec(
            num_scalar_prefetch=0,
            grid=(grid_steps,),
            in_specs=in_specs,
            out_specs=batched((nb, S, H)),
        ),
        compiler_params=pltpu.CompilerParams(dimension_semantics=("parallel",)),
    )(hs, attn_mask_b1s, relmask, w_stack, b_stack)


def reference_jax(hs, attn_mask_b11s, rel, params):
    """Pure-JAX mirror of the PyTorch forward (num_heads == 1), full gather path."""
    q = hs @ params["wq"] + params["bq"]
    k = hs @ params["wk"] + params["bk"]
    v = hs @ params["wv"] + params["bv"]
    scores = jnp.einsum("bqh,bkh->bqk", q, k)
    wdd = jnp.einsum("bqh,dh->bqd", q, params["dist_w"])
    gathered = jnp.take_along_axis(wdd, rel, axis=2)
    gathered = gathered * (rel == 1).astype(jnp.float32)
    scores = (scores + gathered) / math.sqrt(HEAD_SIZE)
    scores = scores + attn_mask_b11s[:, 0]            # [B,1,S]
    probs = jax.nn.softmax(scores, axis=-1)
    ctx = jnp.einsum("bqk,bkh->bqh", probs, v)
    dense = ctx @ params["wo"] + params["bo"]
    y = dense + hs
    mu = jnp.mean(y, axis=-1, keepdims=True)
    var = jnp.mean((y - mu) ** 2, axis=-1, keepdims=True)
    return (y - mu) / jnp.sqrt(var + LN_EPS) * params["ln_g"] + params["ln_b"]


if __name__ == "__main__":
    key = jax.random.PRNGKey(0)
    ks = jax.random.split(key, 12)
    sc = 0.02

    dist_w = sc * jax.random.normal(ks[8], (DISTANCE_TYPE, HIDDEN), jnp.float32)
    dist_w = dist_w.at[0].set(0.0)                    # padding_idx=0 row is zero

    params = {
        "wq": sc * jax.random.normal(ks[0], (HIDDEN, HIDDEN), jnp.float32),
        "bq": sc * jax.random.normal(ks[1], (1, HIDDEN), jnp.float32),
        "wk": sc * jax.random.normal(ks[2], (HIDDEN, HIDDEN), jnp.float32),
        "bk": sc * jax.random.normal(ks[3], (1, HIDDEN), jnp.float32),
        "wv": sc * jax.random.normal(ks[4], (HIDDEN, HIDDEN), jnp.float32),
        "bv": sc * jax.random.normal(ks[5], (1, HIDDEN), jnp.float32),
        "wo": sc * jax.random.normal(ks[6], (HIDDEN, HIDDEN), jnp.float32),
        "bo": sc * jax.random.normal(ks[7], (1, HIDDEN), jnp.float32),
        "dist_w": dist_w,
        "ln_g": jnp.ones((1, HIDDEN), jnp.float32),
        "ln_b": jnp.zeros((1, HIDDEN), jnp.float32),
    }

    hs = jax.random.normal(ks[9], (BATCH, SEQ, HIDDEN), jnp.float32)
    lengths = jnp.array([SEQ, 10], jnp.int32)
    base_mask = jnp.where(jnp.arange(SEQ)[None, :] < lengths[:, None], 0.0, -10000.0)
    base_mask = base_mask.astype(jnp.float32)
    attn_mask_b11s = base_mask[:, None, None, :]      # PyTorch-style [B, 1, 1, S]
    attn_mask_b1s = attn_mask_b11s[:, 0]              # kernel layout [B, 1, S]
    rel = jax.random.randint(ks[10], (BATCH, SEQ, SEQ), 0, DISTANCE_TYPE, dtype=jnp.int32)

    ref = reference_jax(hs, attn_mask_b11s, rel, params)

    # default (chip-aware, collapsed) path
    out = jax.block_until_ready(bert_attention_distance(hs, attn_mask_b1s, rel, params))
    assert out.shape == (BATCH, SEQ, HIDDEN)
    assert bool(jnp.allclose(out, ref, atol=1e-4, rtol=1e-4)), "Pallas kernel mismatch vs JAX reference"

    # validate both grid layouts (collapsed single-step and split grid) explicitly
    for steps in (1, 2):
        o = jax.block_until_ready(
            bert_attention_distance(hs, attn_mask_b1s, rel, params, grid_steps=steps))
        assert bool(jnp.allclose(o, ref, atol=1e-4, rtol=1e-4)), f"mismatch (grid_steps={steps})"

    print("KERNEL_OK")
</pallas_src>

<mosaic_0001>
module attributes {stable_mosaic.version = 11 : i64} {
  func.func @_bert_attn_dist_kernel(%arg0: i32, %arg1: memref<2x16x32xf32, #tpu.memory_space<vmem>>, %arg2: memref<2x1x16xf32, #tpu.memory_space<vmem>>, %arg3: memref<2x16x16xbf16, #tpu.memory_space<vmem>>, %arg4: memref<2x32x128xf32, #tpu.memory_space<vmem>>, %arg5: memref<4x128xf32, #tpu.memory_space<vmem>>, %arg6: memref<2x16x32xf32, #tpu.memory_space<vmem>>) attributes {dimension_semantics = [#tpu.dimension_semantics<parallel>], iteration_bounds = array<i64: 1>, scalar_prefetch = 0 : i64, scratch_operands = 0 : i64, tpu.core_type = #tpu.core_type<tc>, window_params = [{transform_indices = @transform_0, window_bounds = array<i64: 2, 16, 32>}, {transform_indices = @transform_1, window_bounds = array<i64: 2, 1, 16>}, {transform_indices = @transform_2, window_bounds = array<i64: 2, 16, 16>}, {pipeline_mode = #tpu.pipeline_mode<synchronous>, transform_indices = @transform_3, window_bounds = array<i64: 2, 32, 128>}, {pipeline_mode = #tpu.pipeline_mode<synchronous>, transform_indices = @transform_4, window_bounds = array<i64: 4, 128>}, {transform_indices = @transform_5, window_bounds = array<i64: 2, 16, 32>}]} {
    %c0 = arith.constant 0 : index
    %c0_0 = arith.constant 0 : index
    %0 = vector.load %arg5[%c0, %c0_0] : memref<4x128xf32, #tpu.memory_space<vmem>>, vector<4x128xf32>
    %c0_1 = arith.constant 0 : index
    %c0_2 = arith.constant 0 : index
    %c0_3 = arith.constant 0 : index
    %1 = vector.load %arg1[%c0_1, %c0_2, %c0_3] : memref<2x16x32xf32, #tpu.memory_space<vmem>>, vector<2x16x32xf32>
    %2 = vector.shape_cast %1 : vector<2x16x32xf32> to vector<32x32xf32>
    %c0_4 = arith.constant 0 : index
    %c0_5 = arith.constant 0 : index
    %c0_6 = arith.constant 0 : index
    %3 = vector.load %arg4[%c0_4, %c0_5, %c0_6] : memref<2x32x128xf32, #tpu.memory_space<vmem>>, vector<1x32x128xf32>
    %4 = vector.shape_cast %3 : vector<1x32x128xf32> to vector<32x128xf32>
    %cst = arith.constant dense<0.000000e+00> : vector<32x128xf32>
    %5 = tpu.matmul %2, %4, %cst {dimension_numbers = #tpu.dot_dimension_numbers<[1], [0], [0], [1], [0, 0, 1, 1], [], []>} : vector<32x32xf32>, vector<32x128xf32>, vector<32x128xf32> -> vector<32x128xf32>
    %6 = vector.extract_strided_slice %0 {offsets = [0, 0], sizes = [1, 128], strides = [1, 1]} : vector<4x128xf32> to vector<1x128xf32>
    %7 = vector.broadcast %6 : vector<1x128xf32> to vector<32x128xf32>
    %8 = arith.addf %5, %7 : vector<32x128xf32>
    %9 = vector.shape_cast %8 : vector<32x128xf32> to vector<2x16x128xf32>
    %10 = vector.extract_strided_slice %9 {offsets = [0, 0, 0], sizes = [2, 16, 32], strides = [1, 1, 1]} : vector<2x16x128xf32> to vector<2x16x32xf32>
    %11 = vector.extract_strided_slice %9 {offsets = [0, 0, 32], sizes = [2, 16, 32], strides = [1, 1, 1]} : vector<2x16x128xf32> to vector<2x16x32xf32>
    %12 = vector.extract_strided_slice %9 {offsets = [0, 0, 64], sizes = [2, 16, 32], strides = [1, 1, 1]} : vector<2x16x128xf32> to vector<2x16x32xf32>
    %13 = vector.extract_strided_slice %9 {offsets = [0, 0, 96], sizes = [2, 16, 1], strides = [1, 1, 1]} : vector<2x16x128xf32> to vector<2x16x1xf32>
    "tpu.trace_start"() <{level = 10 : i32, message = "bqd,bkd->bqk"}> : () -> ()
    %cst_7 = arith.constant dense<0.000000e+00> : vector<2x16x16xf32>
    %14 = tpu.matmul %10, %11, %cst_7 {dimension_numbers = #tpu.dot_dimension_numbers<[2], [2], [1], [1], [0, 0, 0, 1, 1, 1], [0], [0]>} : vector<2x16x32xf32>, vector<2x16x32xf32>, vector<2x16x16xf32> -> vector<2x16x16xf32>
    "tpu.trace_stop"() : () -> ()
    %c0_8 = arith.constant 0 : index
    %c0_9 = arith.constant 0 : index
    %c0_10 = arith.constant 0 : index
    %15 = vector.load %arg3[%c0_8, %c0_9, %c0_10] : memref<2x16x16xbf16, #tpu.memory_space<vmem>>, vector<2x16x16xbf16>
    %16 = arith.extf %15 : vector<2x16x16xbf16> to vector<2x16x16xf32>
    %17 = vector.broadcast %13 : vector<2x16x1xf32> to vector<2x16x16xf32>
    %18 = arith.mulf %16, %17 : vector<2x16x16xf32>
    %19 = arith.addf %14, %18 : vector<2x16x16xf32>
    %c0_11 = arith.constant 0 : index
    %c0_12 = arith.constant 0 : index
    %c0_13 = arith.constant 0 : index
    %20 = vector.load %arg2[%c0_11, %c0_12, %c0_13] : memref<2x1x16xf32, #tpu.memory_space<vmem>>, vector<2x1x16xf32>
    %21 = vector.broadcast %20 : vector<2x1x16xf32> to vector<2x16x16xf32>
    %22 = arith.addf %19, %21 : vector<2x16x16xf32>
    %cst_14 = arith.constant dense<0xFF800000> : vector<2x16xf32>
    %23 = vector.multi_reduction <maximumf>, %22, %cst_14 [2] : vector<2x16x16xf32> to vector<2x16xf32>
    %24 = vector.shape_cast %23 : vector<2x16xf32> to vector<2x16x1xf32>
    %25 = vector.broadcast %24 : vector<2x16x1xf32> to vector<2x16x16xf32>
    %26 = arith.subf %22, %25 : vector<2x16x16xf32>
    %27 = math.exp %26 : vector<2x16x16xf32>
    %cst_15 = arith.constant dense<0.000000e+00> : vector<2x16xf32>
    %28 = vector.multi_reduction <add>, %27, %cst_15 [2] : vector<2x16x16xf32> to vector<2x16xf32>
    %29 = vector.shape_cast %28 : vector<2x16xf32> to vector<2x16x1xf32>
    %30 = tpu.reciprocal %29 {approx = true} : vector<2x16x1xf32> -> vector<2x16x1xf32>
    %31 = vector.broadcast %30 : vector<2x16x1xf32> to vector<2x16x16xf32>
    %32 = arith.mulf %27, %31 : vector<2x16x16xf32>
    "tpu.trace_start"() <{level = 10 : i32, message = "bqk,bkd->bqd"}> : () -> ()
    %cst_16 = arith.constant dense<0.000000e+00> : vector<2x16x32xf32>
    %33 = tpu.matmul %32, %12, %cst_16 {dimension_numbers = #tpu.dot_dimension_numbers<[2], [1], [1], [2], [0, 0, 0, 1, 1, 2], [0], [0]>} : vector<2x16x16xf32>, vector<2x16x32xf32>, vector<2x16x32xf32> -> vector<2x16x32xf32>
    "tpu.trace_stop"() : () -> ()
    %34 = vector.shape_cast %33 : vector<2x16x32xf32> to vector<32x32xf32>
    %c1 = arith.constant 1 : index
    %c0_17 = arith.constant 0 : index
    %c0_18 = arith.constant 0 : index
    %35 = vector.load %arg4[%c1, %c0_17, %c0_18] : memref<2x32x128xf32, #tpu.memory_space<vmem>>, vector<1x32x128xf32>
    %36 = vector.shape_cast %35 : vector<1x32x128xf32> to vector<32x128xf32>
    %cst_19 = arith.constant dense<0.000000e+00> : vector<32x128xf32>
    %37 = tpu.matmul %34, %36, %cst_19 {dimension_numbers = #tpu.dot_dimension_numbers<[1], [0], [0], [1], [0, 0, 1, 1], [], []>} : vector<32x32xf32>, vector<32x128xf32>, vector<32x128xf32> -> vector<32x128xf32>
    %38 = vector.extract_strided_slice %0 {offsets = [1, 0], sizes = [1, 128], strides = [1, 1]} : vector<4x128xf32> to vector<1x128xf32>
    %39 = vector.broadcast %38 : vector<1x128xf32> to vector<32x128xf32>
    %40 = arith.addf %37, %39 : vector<32x128xf32>
    %41 = vector.extract_strided_slice %40 {offsets = [0, 0], sizes = [32, 32], strides = [1, 1]} : vector<32x128xf32> to vector<32x32xf32>
    %42 = arith.addf %41, %2 : vector<32x32xf32>
    %cst_20 = arith.constant dense<0.000000e+00> : vector<32xf32>
    %43 = vector.multi_reduction <add>, %42, %cst_20 [1] : vector<32x32xf32> to vector<32xf32>
    %44 = vector.shape_cast %43 : vector<32xf32> to vector<32x1xf32>
    %cst_21 = arith.constant 3.200000e+01 : f32
    %45 = vector.broadcast %cst_21 : f32 to vector<32x1xf32>
    %46 = arith.divf %44, %45 : vector<32x1xf32>
    %47 = arith.mulf %42, %42 : vector<32x32xf32>
    %cst_22 = arith.constant dense<0.000000e+00> : vector<32xf32>
    %48 = vector.multi_reduction <add>, %47, %cst_22 [1] : vector<32x32xf32> to vector<32xf32>
    %49 = vector.shape_cast %48 : vector<32xf32> to vector<32x1xf32>
    %cst_23 = arith.constant 3.200000e+01 : f32
    %50 = vector.broadcast %cst_23 : f32 to vector<32x1xf32>
    %51 = arith.divf %49, %50 : vector<32x1xf32>
    %52 = arith.mulf %46, %46 : vector<32x1xf32>
    %53 = arith.subf %51, %52 : vector<32x1xf32>
    %cst_24 = arith.constant 0.000000e+00 : f32
    %54 = vector.broadcast %cst_24 : f32 to vector<32x1xf32>
    %55 = arith.maximumf %53, %54 : vector<32x1xf32>
    %56 = vector.extract_strided_slice %0 {offsets = [2, 0], sizes = [1, 32], strides = [1, 1]} : vector<4x128xf32> to vector<1x32xf32>
    %57 = vector.extract_strided_slice %0 {offsets = [3, 0], sizes = [1, 32], strides = [1, 1]} : vector<4x128xf32> to vector<1x32xf32>
    %58 = vector.broadcast %46 : vector<32x1xf32> to vector<32x32xf32>
    %59 = arith.subf %42, %58 : vector<32x32xf32>
    %cst_25 = arith.constant 9.99999996E-13 : f32
    %60 = vector.broadcast %cst_25 : f32 to vector<32x1xf32>
    %61 = arith.addf %55, %60 : vector<32x1xf32>
    %62 = math.rsqrt %61 : vector<32x1xf32>
    %63 = vector.broadcast %62 : vector<32x1xf32> to vector<32x32xf32>
    %64 = arith.mulf %59, %63 : vector<32x32xf32>
    %65 = vector.broadcast %56 : vector<1x32xf32> to vector<32x32xf32>
    %66 = arith.mulf %64, %65 : vector<32x32xf32>
    %67 = vector.broadcast %57 : vector<1x32xf32> to vector<32x32xf32>
    %68 = arith.addf %66, %67 : vector<32x32xf32>
    %69 = vector.shape_cast %68 : vector<32x32xf32> to vector<2x16x32xf32>
    %c0_26 = arith.constant 0 : index
    %c0_27 = arith.constant 0 : index
    %c0_28 = arith.constant 0 : index
    %70 = vector.load %arg6[%c0_26, %c0_27, %c0_28] : memref<2x16x32xf32, #tpu.memory_space<vmem>>, vector<2x16x32xf32>
    tpu.vector_store %arg6[%c0_26, %c0_27, %c0_28], %69 {strides = array<i32>} : memref<2x16x32xf32, #tpu.memory_space<vmem>>, vector<2x16x32xf32>,
    return
  }
  func.func @transform_0(%arg0: i32) -> (i32, i32, i32) {
    %c0_i32 = arith.constant 0 : i32
    %c0_i32_0 = arith.constant 0 : i32
    %c0_i32_1 = arith.constant 0 : i32
    return %arg0, %c0_i32, %c0_i32_0 : i32, i32, i32
  }
  func.func @transform_1(%arg0: i32) -> (i32, i32, i32) {
    %c0_i32 = arith.constant 0 : i32
    %c0_i32_0 = arith.constant 0 : i32
    %c0_i32_1 = arith.constant 0 : i32
    return %arg0, %c0_i32, %c0_i32_0 : i32, i32, i32
  }
  func.func @transform_2(%arg0: i32) -> (i32, i32, i32) {
    %c0_i32 = arith.constant 0 : i32
    %c0_i32_0 = arith.constant 0 : i32
    %c0_i32_1 = arith.constant 0 : i32
    return %arg0, %c0_i32, %c0_i32_0 : i32, i32, i32
  }
  func.func @transform_3(%arg0: i32) -> (i32, i32, i32) {
    %c0_i32 = arith.constant 0 : i32
    %c0_i32_0 = arith.constant 0 : i32
    %c0_i32_1 = arith.constant 0 : i32
    %c0_i32_2 = arith.constant 0 : i32
    return %c0_i32, %c0_i32_0, %c0_i32_1 : i32, i32, i32
  }
  func.func @transform_4(%arg0: i32) -> (i32, i32) {
    %c0_i32 = arith.constant 0 : i32
    %c0_i32_0 = arith.constant 0 : i32
    %c0_i32_1 = arith.constant 0 : i32
    return %c0_i32, %c0_i32_0 : i32, i32
  }
  func.func @transform_5(%arg0: i32) -> (i32, i32, i32) {
    %c0_i32 = arith.constant 0 : i32
    %c0_i32_0 = arith.constant 0 : i32
    %c0_i32_1 = arith.constant 0 : i32
    return %arg0, %c0_i32, %c0_i32_0 : i32, i32, i32
  }
}

</mosaic_0001>

<bundles_post_ra>
// kernel: tpu_custom_call.1
= control target key start
LH: loop header
LB: loop body
LE: loop exit
PB: predicated region body
PF: predicated region fallthrough
CT: control target
= control target key end

     0   :  { %10 = vsyncpa [#allocation3], 0  ;;  %s1010_s0 = inlined_call_operand.hbm [shape: f32[2,16,32], index: 0, kind: input, shape index: {}]   ;;  %s1011_s1 = inlined_call_operand.hbm [shape: f32[2,1,16], index: 1, kind: input, shape index: {}]   ;;  %s1012_s2 = inlined_call_operand.hbm [shape: bf16[2,16,16], index: 2, kind: input, shape index: {}]   ;;  %s1013_s3 = inlined_call_operand.hbm [shape: f32[2,32,128], index: 3, kind: input, shape index: {}]   ;;  %s1014_s4 = inlined_call_operand.hbm [shape: f32[4,128], index: 4, kind: input, shape index: {}]   ;;  %s1015_s5 = inlined_call_operand.hbm [shape: f32[2,16,32], index: 5, kind: output, shape index: {}]  }
   0x1   :  { %11 = vsyncpa [#allocation6], 0 }
   0x2   :  { %12 = vsyncpa [#allocation9], 0  ;;  %s31_s20 = sshll.u32 %s1011_s1, 4  ;;  %s32_s20 = int_to_ptr.hbm [resolvable:$true] %s31_s20 }
   0x3   :  { %13 = vsyncpa [#allocation4], 0  ;;  %s808_s21 = smov [#allocation5]   ;;  %s809_s23 = smov 16  }
   0x4   :  { %s33_s22 = sshll.u32 %s808_s21, 4  ;;  %s810_s24 = smov 1   ;;  %s34_s22 = int_to_ptr.vmem [resolvable:$true] %s33_s22 }
   0x5   :  { %39 = dma.hbm_to_vmem [thread:$0]  %s32_s20, 32, %s34_s22, [#allocation6], %s809_s23, %s809_s23, %s810_s24  }
   0x6   :  { %s57_s27 = sshll.u32 %s1013_s3, 4  ;;  %s811_s28 = smov [#allocation8]   ;;  %s58_s27 = int_to_ptr.hbm [resolvable:$true] %s57_s27 }
   0x7   :  { %s59_s29 = sshll.u32 %s811_s28, 4  ;;  %s18_s7 = sshll.u32 %s1010_s0, 4  ;;  %s60_s29 = int_to_ptr.vmem [resolvable:$true] %s59_s29  ;;  %s19_s7 = int_to_ptr.hbm [resolvable:$true] %s18_s7 }
   0x8   :  { %s812_s1 = smov 128   ;;  %s813_s8 = smov 8  }
   0x9   :  { %65 = dma.hbm_to_vmem [thread:$0]  %s58_s27, 1024, %s60_s29, [#allocation9], %s812_s1, %s812_s1, %s813_s8  }
   0xa   :  { %s44_s11 = sshll.u32 %s1012_s2, 4  ;;  %s814_s3 = smov [#allocation2]   ;;  %s45_s11 = int_to_ptr.hbm [resolvable:$true] %s44_s11 }
   0xb   :  { %s20_s12 = sshll.u32 %s814_s3, 4  ;;  %s815_s0 = smov [#allocation7]   ;;  %s21_s12 = int_to_ptr.vmem [resolvable:$true] %s20_s12 }
   0xc   :  { %26 = dma.hbm_to_vmem [thread:$0]  %s19_s7, 512, %s21_s12, [#allocation3], %s812_s1, %s812_s1, %s813_s8  }
   0xd   :  { %s46_s13 = sshll.u32 %s815_s0, 4  ;;  %s816_s14 = smov 64   ;;  %s47_s13 = int_to_ptr.vmem [resolvable:$true] %s46_s13 }
   0xe   :  { %s817_s15 = smov 4   ;;  %s71_s2 = sshll.u32 %s1014_s4, 4  ;;  %s72_s2 = int_to_ptr.hbm [resolvable:$true] %s71_s2 }
   0xf   :  { %52 = dma.hbm_to_vmem [thread:$0]  %s45_s11, 256, %s47_s13, [#allocation6], %s816_s14, %s816_s14, %s817_s15  }
  0x10   :  { %s818_s18 = smov [#allocation10]  }
  0x11   :  { %s73_s19 = sshll.u32 %s818_s18, 4  ;;  %s74_s19 = int_to_ptr.vmem [resolvable:$true] %s73_s19 }
  0x12   :  { %76 = dma.hbm_to_vmem [thread:$0]  %s72_s2, 64, %s74_s19, [#allocation9]  }
  0x13   :  { %800 = dma.done.wait [#allocation3], 512  }
  0x14   :  { %801 = vsyncadd [#allocation3], 4294966784 }
  0x15   :  { %802 = dma.done.wait [#allocation6], 288  }
  0x16   :  { %803 = vsyncadd [#allocation6], 4294967008 }
  0x17   :  { %804 = dma.done.wait [#allocation9], 1088  }
  0x18   :  { %805 = vsyncadd [#allocation9], 4294966208  ;;  %v105_v0 = vld [vmem:[#allocation8 + $0x18] sm:$0xff]  ;;  %v104_v1 = vld [vmem:[#allocation8 + $0x10] sm:$0xff]  ;;  %vm107_vm0 = vcmask 261120   ;;  %v819_v8 = vmov 96  }
  0x19   :  { %132 = vmatpush.msra.mxu0 %v105_v0  ;;  %v103_v2 = vld [vmem:[#allocation8 + $0x8] sm:$0xff]  ;;  %v102_v3 = vld [vmem:[#allocation8] sm:$0xff]  ;;  %v880_v5 = vld [vmem:[#allocation2 + $0x8] sm:$0xff]  ;;  %615 = vset.pattern.permute.xlu2 %v819_v8  ;;  %s820_s4 = smov 96   ;;  %vm263_vm1 = vcmask 130048   ;;  %s822_s20 = smov [#allocation11]  }
  0x1a   :  { %v876_v4 = vld [vmem:[#allocation2] sm:$0xff]  ;;  %v884_v6 = vld [vmem:[#allocation2 + $0x10] sm:$0xff]  ;;  %v888_v7 = vld [vmem:[#allocation2 + $0x18] sm:$0xff]  ;;  %616 = vset.pattern.permute.xlu0 %v819_v8  ;;  %617 = vset.pattern.permute.xlu1 %v819_v8  ;;  %s554_s21 = sshll.u32 %s822_s20, 4  ;;  %s556_s24 = sshll.u32 %s1015_s5, 4  ;;  %s555_s21 = int_to_ptr.vmem [resolvable:$true] %s554_s21  ;;  %s557_s24 = int_to_ptr.hbm [resolvable:$true] %s556_s24 }
  0x1b   :  { %133 = vmatpush.msra.mxu0 %v104_v1  ;;  %v892_v9 = vld [vmem:[#allocation10] sm:$0xf]  ;;  %v592_v23 = vld [vmem:[#allocation7] sm:$0xff]   ;;  %v628_v27 = vld [vmem:[#allocation5] ss:$0 sm:$0xff] }
  0x1c   :  { %v106_v10 = vperm.slane %v892_v9, 0  ;;  %v593_v25 = vunpack.c.l.bf16 %v592_v23  ;;  %v594_v30 = vunpack.c.h.bf16 %v592_v23  ;;  %v599_v35 = vld [vmem:[#allocation7 + $0x8] sm:$0xff]   ;;  %v629_v43 = vld [vmem:[#allocation5 + $0x1] ss:$0 sm:$0xff] }
  0x1d   :  { %134 = vmatpush.msra.mxu0 %v103_v2  ;;  %v597_v38 = vunpack.c.l.bf16 %v599_v35  ;;  %v598_v46 = vunpack.c.h.bf16 %v599_v35 }
  0x1f   :  { %135 = vmatpush.msra.mxu0 %v102_v3 }
  0x20   :  { %571 = vmatmul.msk.f32.vlgmr.msra.gmra.mxu0 %vm107_vm0, %v876_v4 }
  0x28   :  { %572 = vmatmul.msk.f32.gmra.mxu0 %vm107_vm0, %v880_v5 }
  0x30   :  { %573 = vmatmul.msk.f32.gmra.mxu0 %vm107_vm0, %v884_v6 }
  0x38   :  { %574 = vmatmul.msk.f32.gmra.mxu0 %vm107_vm0, %v888_v7 }
  0x9d   :  { %v137_v11 = vpop.f32.mrf.mxu0 }
  0x9e   :  { %v895_v12 = vadd.f32 %v137_v11, %v106_v10 }
  0xa0   :  { %159 = vperm.xlu2 %615, %v895_v12  }
  0xa5   :  { %v140_v13 = vpop.f32.mrf.mxu0 }
  0xa6   :  { %v898_v14 = vadd.f32 %v140_v13, %v106_v10 }
  0xa8   :  { %183 = vrot.lane.b32.xlu0 %v898_v14, %s820_s4  ;;  %164 = vperm.xlu2 %615, %v898_v14   ;;  %v618_v55 = vpack.i.bf16 %v895_v12, %v898_v14 }
  0xad   :  { %v143_v15 = vpop.f32.mrf.mxu0 }
  0xae   :  { %v903_v17 = vadd.f32 %v143_v15, %v106_v10 }
  0xb0   :  { %181 = vrot.lane.b32.xlu0 %v895_v12, %s820_s4 }
  0xb5   :  { %v146_v16 = vpop.f32.mrf.mxu0 }
  0xb6   :  { %v905_v18 = vadd.f32 %v146_v16, %v106_v10 }
  0xb8   :  { %218 = vrot.lane.b32.xlu1 %v905_v18, %s820_s4  ;;  %169 = vperm.xlu0 %616, %v903_v17  }
  0xc0   :  { %216 = vrot.lane.b32.xlu1 %v903_v17, %s820_s4 }
  0xc8   :  { %174 = vperm.xlu1 %617, %v905_v18  }
  0xfa   :  { %v160_v24 = vpop.permute.xlu2 %159 }
  0xfb   :  { %v177_v26 = vmul.f32 %v593_v25, %v160_v24  ;;  %v382_v24 = vld [vmem:[#allocation8 + $0x38] sm:$0xff]  ;;  %v381_v25 = vld [vmem:[#allocation8 + $0x30] sm:$0xff] }
  0xfc   :  { %408 = vmatpush.msra.mxu1 %v382_v24 }
  0xfe   :  { %409 = vmatpush.msra.mxu1 %v381_v25 }
 0x102   :  { %v165_v32 = vpop.permute.xlu2 %164 }
 0x103   :  { %v178_v34 = vmul.f32 %v594_v30, %v165_v32 }
 0x11a   :  { %v184_v19 = vpop.permute.xlu0 %183 }
 0x11b   :  { %575 = vmatpush.xpose.msk.msra.mxu2 %vm107_vm0, %v184_v19 }
 0x122   :  { %v182_v20 = vpop.permute.xlu0 %181 }
 0x123   :  { %576 = vmatpush.xpose.msk.msra.mxu2 %vm107_vm0, %v182_v20 }
 0x126   :  { %577 = vmatmul.msk.f32.vlgmr.msra.gmra.mxu2 %vm107_vm0, %v895_v12 }
 0x12a   :  { %v219_v21 = vpop.permute.xlu1 %218  ;;  %v170_v40 = vpop.permute.xlu0 %169 }
 0x12b   :  { %579 = vmatpush.xpose.msk.msrb.mxu2 %vm107_vm0, %v219_v21  ;;  %v179_v42 = vmul.f32 %v597_v38, %v170_v40 }
 0x12e   :  { %578 = vmatmul.msk.f32.gmra.mxu2 %vm107_vm0, %v898_v14 }
 0x132   :  { %v217_v22 = vpop.permute.xlu1 %216 }
 0x133   :  { %580 = vmatpush.xpose.msk.msrb.mxu2 %vm107_vm0, %v217_v22  ;;  %v623_v22 = vpack.i.bf16 %v903_v17, %v905_v18 }
 0x136   :  { %581 = vmatmul.msk.f32.vlgmr.msrb.gmra.mxu2 %vm107_vm0, %v903_v17 }
 0x13a   :  { %v175_v48 = vpop.permute.xlu1 %174 }
 0x13b   :  { %v180_v50 = vmul.f32 %v598_v46, %v175_v48 }
 0x13e   :  { %582 = vmatmul.msk.f32.gmra.mxu2 %vm107_vm0, %v905_v18 }
 0x1a9   :  { %v210_v28 = vpop.f32.mrf.mxu2 }
 0x1aa   :  { %v211_v29 = vadd.f32 %v210_v28, %v177_v26  ;;  %v380_v26 = vld [vmem:[#allocation8 + $0x28] sm:$0xff] }
 0x1ab   :  { %410 = vmatpush.msra.mxu1 %v380_v26 }
 0x1ac   :  { %v259_v31 = vadd.f32 %v628_v27, %v211_v29 }
 0x1ae   :  { %v264_v33 = vsel %vm263_vm1, %v259_v31, -inf }
 0x1af   :  { %265 = vmax.xlane.f32.xlu2 %v264_v33 }
 0x1b1   :  { %v213_v36 = vpop.f32.mrf.mxu2 }
 0x1b2   :  { %v214_v37 = vadd.f32 %v213_v36, %v178_v34 }
 0x1b4   :  { %v260_v39 = vadd.f32 %v628_v27, %v214_v37 }
 0x1b6   :  { %v267_v41 = vsel %vm263_vm1, %v260_v39, -inf }
 0x1b7   :  { %268 = vmax.xlane.f32.xlu1 %v267_v41 }
 0x1b9   :  { %v245_v44 = vpop.f32.mrf.mxu2 }
 0x1ba   :  { %v246_v45 = vadd.f32 %v245_v44, %v179_v42  ;;  %v383_v44 = vperm.slane %v892_v9, 1 }
 0x1bc   :  { %v261_v47 = vadd.f32 %v629_v43, %v246_v45 }
 0x1be   :  { %v270_v49 = vsel %vm263_vm1, %v261_v47, -inf }
 0x1bf   :  { %271 = vmax.xlane.f32.xlu0 %v270_v49 }
 0x1c1   :  { %v248_v51 = vpop.f32.mrf.mxu2 }
 0x1c2   :  { %v249_v52 = vadd.f32 %v248_v51, %v180_v50 }
 0x1c4   :  { %v262_v53 = vadd.f32 %v629_v43, %v249_v52 }
 0x1c6   :  { %v273_v54 = vsel %vm263_vm1, %v262_v53, -inf }
 0x1c7   :  { %274 = vmax.xlane.f32.xlu2 %v273_v54 }
 0x1d0   :  { %619 = vrot.lane.b32.xlu1 %v618_v55, %s816_s14 }
 0x222   :  { %v266_v56 = vpop.xlane.xlu2 %265 }
 0x223   :  { %v276_v57 = vsub.f32 %v259_v31, %v266_v56 }
 0x225   :  { %v280_v58 = vmul.f32 1.442695, %v276_v57 }
 0x227   :  { %630 = vpow2.f32 %v280_v58 }
 0x22a   :  { %v269_v59 = vpop.xlane.xlu1 %268 }
 0x22b   :  { %v277_v60 = vsub.f32 %v260_v39, %v269_v59  ;;  %v379_v39 = vld [vmem:[#allocation8 + $0x20] sm:$0xff] }
 0x22c   :  { %411 = vmatpush.msra.mxu1 %v379_v39 }
 0x22d   :  { %v631_v61 = vpop.eup %630  ;;  %v282_v62 = vmul.f32 1.442695, %v277_v60 }
 0x22e   :  { %v288_v63 = vsel %vm263_vm1, %v631_v61, 0.0 }
 0x22f   :  { %632 = vpow2.f32 %v282_v62  ;;  %289 = vadd.xlane.f32.xlu2 %v288_v63 }
 0x232   :  { %v272_v0 = vpop.xlane.xlu0 %271 }
 0x233   :  { %v278_v1 = vsub.f32 %v261_v47, %v272_v0 }
 0x235   :  { %v633_v2 = vpop.eup %632  ;;  %v284_v3 = vmul.f32 1.442695, %v278_v1  ;;  %v821_v1 = vmov 32.0  }
 0x236   :  { %v291_v8 = vsel %vm263_vm1, %v633_v2, 0.0 }
 0x237   :  { %634 = vpow2.f32 %v284_v3  ;;  %292 = vadd.xlane.f32.xlu2 %v291_v8 }
 0x23a   :  { %v275_v10 = vpop.xlane.xlu2 %274 }
 0x23b   :  { %v279_v11 = vsub.f32 %v262_v53, %v275_v10 }
 0x23d   :  { %v635_v12 = vpop.eup %634  ;;  %v286_v13 = vmul.f32 1.442695, %v279_v11 }
 0x23e   :  { %v294_v14 = vsel %vm263_vm1, %v635_v12, 0.0 }
 0x23f   :  { %636 = vpow2.f32 %v286_v13  ;;  %295 = vadd.xlane.f32.xlu0 %v294_v14 }
 0x242   :  { %v620_v15 = vpop.permute.xlu1 %619 }
 0x243   :  { %v621_v16 = vunpack.i.l.bf16 %v620_v15  ;;  %v622_v20 = vunpack.i.h.bf16 %v620_v15 }
 0x245   :  { %v637_v19 = vpop.eup %636  ;;  %334 = vmatpush.msra.mxu3 %v621_v16 }
 0x246   :  { %v297_v21 = vsel %vm263_vm1, %v637_v19, 0.0 }
 0x247   :  { %335 = vmatpush.msra.mxu3 %v622_v20  ;;  %298 = vadd.xlane.f32.xlu0 %v297_v21 }
 0x24f   :  { %624 = vrot.lane.b32.xlu2 %v623_v22, %s816_s14 }
 0x2a2   :  { %v290_v23 = vpop.xlane.xlu2 %289 }
 0x2a3   :  { %638 = vrcp.f32 %v290_v23 }
 0x2a9   :  { %v639_v27 = vpop.eup %638 }
 0x2aa   :  { %v293_v28 = vpop.xlane.xlu2 %292  ;;  %v304_v29 = vmul.f32 %v639_v27, %v631_v61 }
 0x2ab   :  { %640 = vrcp.f32 %v293_v28 }
 0x2ac   :  { %583 = vmatmul.msk.f32.vlgmr.msra.gmra.mxu3 %vm263_vm1, %v304_v29 }
 0x2b1   :  { %v641_v30 = vpop.eup %640 }
 0x2b2   :  { %v625_v31 = vpop.permute.xlu2 %624  ;;  %v296_v32 = vpop.xlane.xlu0 %295  ;;  %v305_v17 = vmul.f32 %v641_v30, %v633_v2 }
 0x2b3   :  { %642 = vrcp.f32 %v296_v32  ;;  %v626_v18 = vunpack.i.l.bf16 %v625_v31  ;;  %v627_v33 = vunpack.i.h.bf16 %v625_v31 }
 0x2b4   :  { %584 = vmatmul.msk.f32.gmra.mxu3 %vm263_vm1, %v305_v17 }
 0x2b5   :  { %369 = vmatpush.msrb.mxu3 %v626_v18 }
 0x2b7   :  { %370 = vmatpush.msrb.mxu3 %v627_v33 }
 0x2b9   :  { %v643_v34 = vpop.eup %642 }
 0x2ba   :  { %v299_v35 = vpop.xlane.xlu0 %298  ;;  %v306_v36 = vmul.f32 %v643_v34, %v635_v12 }
 0x2bb   :  { %644 = vrcp.f32 %v299_v35 }
 0x2bc   :  { %585 = vmatmul.msk.f32.vlgmr.msrb.gmra.mxu3 %vm263_vm1, %v306_v36  ;;  %646 = vrcp.f32 %v821_v1 }
 0x2c1   :  { %v645_v37 = vpop.eup %644 }
 0x2c2   :  { %v307_v38 = vmul.f32 %v645_v37, %v637_v19  ;;  %v647_v2 = vpop.eup %646 }
 0x2c3   :  { %v442_v3 = vmul.f32 32.0, %v647_v2  ;;  %vm446_vm2 = vweird.f32 %v647_v2 }
 0x2c4   :  { %586 = vmatmul.msk.f32.gmra.mxu3 %vm263_vm1, %v307_v38 }
 0x2c5   :  { %v443_v8 = vsub.f32 1.0, %v442_v3 }
 0x2c7   :  { %v444_v11 = vmul.f32 %v647_v2, %v443_v8 }
 0x2c9   :  { %v445_v12 = vadd.f32 %v647_v2, %v444_v11 }
 0x2cb   :  { %v447_v14 = vsel %vm446_vm2, %v647_v2, %v445_v12 }
 0x32f   :  { %v337_v40 = vpop.f32.mrf.mxu3 }
 0x330   :  { %587 = vmatmul.msk.f32.vlgmr.msra.gmra.mxu1 %vm107_vm0, %v337_v40 }
 0x337   :  { %v340_v41 = vpop.f32.mrf.mxu3 }
 0x338   :  { %588 = vmatmul.msk.f32.gmra.mxu1 %vm107_vm0, %v340_v41 }
 0x33f   :  { %v372_v42 = vpop.f32.mrf.mxu3 }
 0x340   :  { %589 = vmatmul.msk.f32.gmra.mxu1 %vm107_vm0, %v372_v42 }
 0x347   :  { %v375_v43 = vpop.f32.mrf.mxu3 }
 0x348   :  { %590 = vmatmul.msk.f32.gmra.mxu1 %vm107_vm0, %v375_v43 }
 0x3ad   :  { %v413_v45 = vpop.f32.mrf.mxu1 }
 0x3ae   :  { %v414_v46 = vadd.f32 %v413_v45, %v383_v44  ;;  %v985_v45 = vperm.slane %v892_v9, 2 }
 0x3b0   :  { %v947_v47 = vadd.f32 %v414_v46, %v876_v4 }
 0x3b2   :  { %v429_v48 = vsel %vm107_vm0, %v947_v47, 0.0  ;;  %v452_v58 = vmul.f32 %v947_v47, %v947_v47 }
 0x3b3   :  { %430 = vadd.xlane.f32.xlu0 %v429_v48 }
 0x3b4   :  { %v456_v59 = vsel %vm107_vm0, %v452_v58, 0.0 }
 0x3b5   :  { %v416_v49 = vpop.f32.mrf.mxu1 }
 0x3b6   :  { %v417_v50 = vadd.f32 %v416_v49, %v383_v44 }
 0x3b8   :  { %v952_v51 = vadd.f32 %v417_v50, %v880_v5 }
 0x3ba   :  { %v432_v52 = vsel %vm107_vm0, %v952_v51, 0.0 }
 0x3bb   :  { %433 = vadd.xlane.f32.xlu1 %v432_v52 }
 0x3bd   :  { %v419_v53 = vpop.f32.mrf.mxu1 }
 0x3be   :  { %v420_v54 = vadd.f32 %v419_v53, %v383_v44 }
 0x3c0   :  { %v957_v55 = vadd.f32 %v420_v54, %v884_v6  ;;  %v453_v6 = vmul.f32 %v952_v51, %v952_v51 }
 0x3c2   :  { %v435_v4 = vsel %vm107_vm0, %v957_v55, 0.0  ;;  %v459_v61 = vsel %vm107_vm0, %v453_v6, 0.0  ;;  %v454_v62 = vmul.f32 %v957_v55, %v957_v55 }
 0x3c3   :  { %436 = vadd.xlane.f32.xlu0 %v435_v4 }
 0x3c4   :  { %v462_v63 = vsel %vm107_vm0, %v454_v62, 0.0 }
 0x3c5   :  { %v422_v56 = vpop.f32.mrf.mxu1 }
 0x3c6   :  { %v423_v57 = vadd.f32 %v422_v56, %v383_v44  ;;  %v541_v56 = vperm.slane %v892_v9, 3 }
 0x3c8   :  { %v964_v5 = vadd.f32 %v423_v57, %v888_v7 }
 0x3ca   :  { %v438_v60 = vsel %vm107_vm0, %v964_v5, 0.0  ;;  %v455_v7 = vmul.f32 %v964_v5, %v964_v5 }
 0x3cb   :  { %457 = vadd.xlane.f32.xlu0 %v456_v59  ;;  %439 = vadd.xlane.f32.xlu2 %v438_v60 }
 0x3cc   :  { %v465_v0 = vsel %vm107_vm0, %v455_v7, 0.0 }
 0x3d3   :  { %460 = vadd.xlane.f32.xlu0 %v459_v61 }
 0x3db   :  { %463 = vadd.xlane.f32.xlu0 %v462_v63 }
 0x3e3   :  { %466 = vadd.xlane.f32.xlu0 %v465_v0 }
 0x426   :  { %v431_v10 = vpop.xlane.xlu0 %430 }
 0x427   :  { %v448_v15 = vmul.f32 %v447_v14, %v431_v10 }
 0x429   :  { %v472_v19 = vmul.f32 %v448_v15, %v448_v15  ;;  %v484_v50 = vsub.f32 %v947_v47, %v448_v15 }
 0x42e   :  { %v434_v21 = vpop.xlane.xlu1 %433 }
 0x42f   :  { %v449_v23 = vmul.f32 %v447_v14, %v434_v21 }
 0x431   :  { %v473_v27 = vmul.f32 %v449_v23, %v449_v23  ;;  %v485_v1 = vsub.f32 %v952_v51, %v449_v23 }
 0x436   :  { %v437_v13 = vpop.xlane.xlu0 %436 }
 0x437   :  { %v978_v30 = vmul.f32 %v447_v14, %v437_v13 }
 0x439   :  { %v474_v34 = vmul.f32 %v978_v30, %v978_v30  ;;  %v486_v51 = vsub.f32 %v957_v55, %v978_v30 }
 0x43e   :  { %v458_v16 = vpop.xlane.xlu0 %457  ;;  %v440_v36 = vpop.xlane.xlu2 %439 }
 0x43f   :  { %v468_v20 = vmul.f32 %v458_v16, %v447_v14  ;;  %v982_v40 = vmul.f32 %v447_v14, %v440_v36 }
 0x441   :  { %v476_v22 = vsub.f32 %v468_v20, %v472_v19  ;;  %v475_v52 = vmul.f32 %v982_v40, %v982_v40 }
 0x443   :  { %v480_v24 = vmax.f32 %v476_v22, 0.0 }
 0x445   :  { %v488_v25 = vadd.f32 1e-12, %v480_v24 }
 0x446   :  { %v461_v26 = vpop.xlane.xlu0 %460 }
 0x447   :  { %648 = vrsqrt.f32 %v488_v25  ;;  %v469_v28 = vmul.f32 %v461_v26, %v447_v14  ;;  %vm498_vm4 = vweird.f32 %v488_v25  ;;  %v487_v26 = vsub.f32 %v964_v5, %v982_v40 }
 0x449   :  { %v477_v29 = vsub.f32 %v469_v28, %v473_v27 }
 0x44b   :  { %v481_v31 = vmax.f32 %v477_v29, 0.0 }
 0x44d   :  { %v649_v32 = vpop.eup %648  ;;  %v489_v17 = vadd.f32 1e-12, %v481_v31 }
 0x44e   :  { %v493_v18 = vmul.f32 %v649_v32, %v488_v25  ;;  %v464_v33 = vpop.xlane.xlu0 %463  ;;  %vm499_vm3 = vweird.f32 %v649_v32 }
 0x44f   :  { %650 = vrsqrt.f32 %v489_v17  ;;  %v470_v35 = vmul.f32 %v464_v33, %v447_v14  ;;  %vm500_vm5 = vmor %vm498_vm4, %vm499_vm3  ;;  %vm508_vm7 = vweird.f32 %v489_v17 }
 0x450   :  { %v494_v37 = vmul.f32 %v649_v32, %v493_v18 }
 0x451   :  { %v478_v38 = vsub.f32 %v470_v35, %v474_v34 }
 0x452   :  { %v495_v39 = vmul.f32 0.5, %v494_v37 }
 0x453   :  { %v482_v41 = vmax.f32 %v478_v38, 0.0 }
 0x454   :  { %v496_v42 = vsub.f32 1.5, %v495_v39 }
 0x455   :  { %v651_v43 = vpop.eup %650  ;;  %v490_v44 = vadd.f32 1e-12, %v482_v41 }
 0x456   :  { %v497_v46 = vmul.f32 %v649_v32, %v496_v42  ;;  %v503_v48 = vmul.f32 %v651_v43, %v489_v17  ;;  %v467_v49 = vpop.xlane.xlu0 %466  ;;  %vm509_vm6 = vweird.f32 %v651_v43 }
 0x457   :  { %652 = vrsqrt.f32 %v490_v44  ;;  %v471_v53 = vmul.f32 %v467_v49, %v447_v14  ;;  %vm510_vm8 = vmor %vm508_vm7, %vm509_vm6  ;;  %vm518_vm10 = vweird.f32 %v490_v44 }
 0x458   :  { %v501_v54 = vsel %vm500_vm5, %v649_v32, %v497_v46  ;;  %v504_v4 = vmul.f32 %v651_v43, %v503_v48 }
 0x459   :  { %v532_v57 = vmul.f32 %v501_v54, %v484_v50  ;;  %v479_v58 = vsub.f32 %v471_v53, %v475_v52 }
 0x45a   :  { %v505_v59 = vmul.f32 0.5, %v504_v4 }
 0x45b   :  { %v537_v60 = vmul.f32 %v985_v45, %v532_v57  ;;  %v483_v6 = vmax.f32 %v479_v58, 0.0 }
 0x45c   :  { %v506_v61 = vsub.f32 1.5, %v505_v59 }
 0x45d   :  { %v653_v62 = vpop.eup %652  ;;  %v491_v47 = vadd.f32 1e-12, %v483_v6  ;;  %v542_v63 = vadd.f32 %v541_v56, %v537_v60 }
 0x45e   :  { %v507_v7 = vmul.f32 %v651_v43, %v506_v61  ;;  %v513_v0 = vmul.f32 %v653_v62, %v490_v44  ;;  %vm519_vm9 = vweird.f32 %v653_v62 }
 0x45f   :  { %654 = vrsqrt.f32 %v491_v47  ;;  %546 = vst.msk [vmem:[#allocation11] sm:$0xff] %vm107_vm0, %v542_v63  ;;  %vm520_vm11 = vmor %vm518_vm10, %vm519_vm9  ;;  %vm528_vm13 = vweird.f32 %v491_v47 }
 0x460   :  { %v511_v9 = vsel %vm510_vm8, %v651_v43, %v507_v7  ;;  %v514_v2 = vmul.f32 %v653_v62, %v513_v0 }
 0x461   :  { %v533_v3 = vmul.f32 %v511_v9, %v485_v1 }
 0x462   :  { %v515_v8 = vmul.f32 0.5, %v514_v2 }
 0x463   :  { %v538_v10 = vmul.f32 %v985_v45, %v533_v3 }
 0x464   :  { %v516_v11 = vsub.f32 1.5, %v515_v8 }
 0x465   :  { %v655_v12 = vpop.eup %654  ;;  %v543_v13 = vadd.f32 %v541_v56, %v538_v10 }
 0x466   :  { %v517_v14 = vmul.f32 %v653_v62, %v516_v11  ;;  %v523_v15 = vmul.f32 %v655_v12, %v491_v47  ;;  %vm529_vm12 = vweird.f32 %v655_v12 }
 0x467   :  { %547 = vst.msk [vmem:[#allocation11 + $0x8] sm:$0xff] %vm107_vm0, %v543_v13  ;;  %vm530_vm14 = vmor %vm528_vm13, %vm529_vm12 }
 0x468   :  { %v521_v16 = vsel %vm520_vm11, %v653_v62, %v517_v14  ;;  %v524_v19 = vmul.f32 %v655_v12, %v523_v15 }
 0x469   :  { %v534_v20 = vmul.f32 %v521_v16, %v486_v51 }
 0x46a   :  { %v525_v21 = vmul.f32 0.5, %v524_v19 }
 0x46b   :  { %v539_v22 = vmul.f32 %v985_v45, %v534_v20 }
 0x46c   :  { %v526_v23 = vsub.f32 1.5, %v525_v21 }
 0x46d   :  { %v544_v24 = vadd.f32 %v541_v56, %v539_v22 }
 0x46e   :  { %v527_v25 = vmul.f32 %v655_v12, %v526_v23 }
 0x46f   :  { %548 = vst.msk [vmem:[#allocation11 + $0x10] sm:$0xff] %vm107_vm0, %v544_v24 }
 0x470   :  { %v531_v55 = vsel %vm530_vm14, %v655_v12, %v527_v25 }
 0x471   :  { %v535_v27 = vmul.f32 %v531_v55, %v487_v26 }
 0x473   :  { %v540_v28 = vmul.f32 %v985_v45, %v535_v27 }
 0x475   :  { %v545_v29 = vadd.f32 %v541_v56, %v540_v28 }
 0x477   :  { %549 = vst.msk [vmem:[#allocation11 + $0x18] sm:$0xff] %vm107_vm0, %v545_v29 }
 0x478   :  { %562 = dma.vmem_to_hbm [thread:$0]  %s555_s21, 512, %s557_s24, [#allocation4], %s812_s1, %s812_s1, %s813_s8  }
 0x479   :  { %806 = dma.done.wait [#allocation4], 512  }
 0x47a   :  { %807 = vsyncadd [#allocation4], 4294966784 }
 0x47b   :  { %567 = vsyncpa [#allocation3], 1 }
 0x47c   :  { %568 = vsyncpa [#allocation6], 1 }
 0x47d   :  { %569 = vsyncpa [#allocation9], 1 }
 0x47e   :  { %570 = vsyncpa [#allocation4], 1 }

</bundles_post_ra>
